<compile_context>
chip_gen: v7x
topology: tpu7x:2x2x1
jax: 0.10.0
libtpu: 0.0.40
codegen_flags: <defaults>
</compile_context>

<pallas_src>
import jax
import jax.numpy as jnp
from jax.experimental import pallas as pl
from jax.experimental.pallas import tpu as pltpu


def binarize_kernel(w_ref, mem_ref, memt_ref, out_ref):
    # w_ref:    (9, TM)   lane-dense flattened 3x3 filter slices for this grid step
    # mem_ref:  (P, 9)    updated sign memory (resident)
    # memt_ref: (9, P)    its transpose (resident; precomputed in wrapper)
    w = w_ref[...]
    mem = mem_ref[...]
    mem_t = memt_ref[...]

    # similarity of every (+/-1) memory pattern with every filter column: (P, TM)
    sim = jnp.dot(mem, w, preferred_element_type=jnp.float32)

    # argmax over patterns (sublane axis, first maximal index like torch.argmax),
    # built from iota/compare so it lowers cleanly on TPU
    n_pat = sim.shape[0]
    row = jax.lax.broadcasted_iota(jnp.int32, sim.shape, 0)          # (P, TM)
    max_sim = jnp.max(sim, axis=0, keepdims=True)                    # (1, TM)
    idx = jnp.min(jnp.where(sim >= max_sim, row, n_pat),
                  axis=0, keepdims=True)                             # (1, TM)
    onehot = (row == idx).astype(jnp.float32)                        # (P, TM)

    # gather selected patterns via MXU matmul -> lane-dense (9, TM) output
    out_ref[...] = jnp.dot(mem_t, onehot, preferred_element_type=jnp.float32)


def binarize_forward(weights, patterns, memory, tile_cap=16384):
    """weights: [out_c, in_c, 3, 3] f32; patterns/memory: [2**bit_num, 9] f32.

    Returns (binary_weights with weights.shape, updated memory)."""
    orig_shape = weights.shape
    w2 = weights.reshape(-1, 9).astype(jnp.float32)
    m_rows = w2.shape[0]

    # memory update is tiny (n_pat x 9): do it once in plain JAX, pass resident
    patterns = patterns.astype(jnp.float32)
    memory = memory.astype(jnp.float32)
    new_mem = jnp.where(jnp.abs(patterns) >= 0.001, jnp.sign(patterns), memory)
    new_mem_t = new_mem.T                                            # (9, P)
    n_pat = new_mem.shape[0]

    # lane-dense layout: the 9-wide filter axis on sublanes, rows on lanes
    w_t = w2.T                                                       # (9, M)
    tm = min(tile_cap, ((m_rows + 127) // 128) * 128)                # multiple of 128
    m_pad = pl.cdiv(m_rows, tm) * tm
    if m_pad != m_rows:
        w_t = jnp.pad(w_t, ((0, 0), (0, m_pad - m_rows)))            # zero cols -> sliced off

    cost = pl.CostEstimate(flops=4 * m_pad * n_pat * 9,
                           transcendentals=0,
                           bytes_accessed=2 * m_pad * 9 * 4)

    binary_t = pl.pallas_call(
        binarize_kernel,
        out_shape=jax.ShapeDtypeStruct((9, m_pad), jnp.float32),
        grid_spec=pltpu.PrefetchScalarGridSpec(
            num_scalar_prefetch=0,
            grid=(m_pad // tm,),
            in_specs=[
                pl.BlockSpec((9, tm), lambda i: (0, i)),             # weight columns
                pl.BlockSpec((n_pat, 9), lambda i: (0, 0)),          # memory (resident)
                pl.BlockSpec((9, n_pat), lambda i: (0, 0)),          # memory^T (resident)
            ],
            out_specs=pl.BlockSpec((9, tm), lambda i: (0, i)),       # binary weight columns
        ),
        compiler_params=pltpu.CompilerParams(
            dimension_semantics=("parallel",)),                      # megacore on v7x
        cost_estimate=cost,
    )(w_t, new_mem, new_mem_t)

    binary = binary_t[:, :m_rows].T.reshape(orig_shape)
    return binary, new_mem


if __name__ == "__main__":
    key = jax.random.PRNGKey(0)
    k_pat, k_w = jax.random.split(key)

    # deterministic stand-in for get_random_patterns(bit_num)
    bit_num = 4
    n_pat = 2 ** bit_num
    patterns = jax.random.uniform(k_pat, (n_pat, 9), jnp.float32,
                                  minval=-1.0, maxval=1.0)
    patterns = jnp.where(jnp.abs(patterns) < 0.01, 0.01, patterns)
    memory = jnp.sign(patterns)            # as in Binarize.__init__

    # small conv weight tensor (NCHW filter layout): [out_c, in_c, 3, 3]
    out_c, in_c = 4, 4
    weights = jax.random.normal(k_w, (out_c, in_c, 3, 3), jnp.float32) * 0.1

    binary_weights, new_memory = binarize_forward(weights, patterns, memory)
    jax.block_until_ready((binary_weights, new_memory))

    assert binary_weights.shape == weights.shape
    assert new_memory.shape == patterns.shape

    # sanity: every output row must be one of the +/-1 memory patterns
    bw_rows = binary_weights.reshape(-1, 9)
    match = (bw_rows[:, None, :] == new_memory[None, :, :]).all(-1).any(-1)
    assert bool(match.all())

    print("KERNEL_OK")
</pallas_src>

<mosaic_0001>
module attributes {stable_mosaic.version = 11 : i64} {
  func.func @binarize_kernel(%arg0: i32, %arg1: memref<9x128xf32, #tpu.memory_space<vmem>>, %arg2: memref<16x9xf32, #tpu.memory_space<vmem>>, %arg3: memref<9x16xf32, #tpu.memory_space<vmem>>, %arg4: memref<9x128xf32, #tpu.memory_space<vmem>>) attributes {dimension_semantics = [#tpu.dimension_semantics<parallel>], iteration_bounds = array<i64: 1>, scalar_prefetch = 0 : i64, scratch_operands = 0 : i64, tpu.core_type = #tpu.core_type<tc>, window_params = [{transform_indices = @transform_0, window_bounds = array<i64: 9, 128>}, {pipeline_mode = #tpu.pipeline_mode<synchronous>, transform_indices = @transform_1, window_bounds = array<i64: 16, 9>}, {pipeline_mode = #tpu.pipeline_mode<synchronous>, transform_indices = @transform_2, window_bounds = array<i64: 9, 16>}, {transform_indices = @transform_3, window_bounds = array<i64: 9, 128>}]} {
    %c0 = arith.constant 0 : index
    %c0_0 = arith.constant 0 : index
    %0 = vector.load %arg1[%c0, %c0_0] : memref<9x128xf32, #tpu.memory_space<vmem>>, vector<9x128xf32>
    %c0_1 = arith.constant 0 : index
    %c0_2 = arith.constant 0 : index
    %1 = vector.load %arg2[%c0_1, %c0_2] : memref<16x9xf32, #tpu.memory_space<vmem>>, vector<16x9xf32>
    %c0_3 = arith.constant 0 : index
    %c0_4 = arith.constant 0 : index
    %2 = vector.load %arg3[%c0_3, %c0_4] : memref<9x16xf32, #tpu.memory_space<vmem>>, vector<9x16xf32>
    %cst = arith.constant dense<0.000000e+00> : vector<16x128xf32>
    %3 = tpu.matmul %1, %0, %cst {dimension_numbers = #tpu.dot_dimension_numbers<[1], [0], [0], [1], [0, 0, 1, 1], [], []>} : vector<16x9xf32>, vector<9x128xf32>, vector<16x128xf32> -> vector<16x128xf32>
    %4 = tpu.iota {dimensions = array<i32: 0>} : vector<16x128xi32>
    %cst_5 = arith.constant dense<0xFF800000> : vector<128xf32>
    %5 = vector.multi_reduction <maximumf>, %3, %cst_5 [0] : vector<16x128xf32> to vector<128xf32>
    %6 = vector.shape_cast %5 : vector<128xf32> to vector<1x128xf32>
    %7 = vector.broadcast %6 : vector<1x128xf32> to vector<16x128xf32>
    %8 = arith.cmpf oge, %3, %7 : vector<16x128xf32>
    %c16_i32 = arith.constant 16 : i32
    %9 = vector.broadcast %c16_i32 : i32 to vector<16x128xi32>
    %10 = arith.select %8, %4, %9 : vector<16x128xi1>, vector<16x128xi32>
    %cst_6 = arith.constant dense<2147483647> : vector<128xi32>
    %11 = vector.multi_reduction <minsi>, %10, %cst_6 [0] : vector<16x128xi32> to vector<128xi32>
    %12 = vector.shape_cast %11 : vector<128xi32> to vector<1x128xi32>
    %13 = vector.broadcast %12 : vector<1x128xi32> to vector<16x128xi32>
    %14 = arith.cmpi eq, %4, %13 : vector<16x128xi32>
    %15 = arith.extui %14 : vector<16x128xi1> to vector<16x128xi32>
    %16 = arith.sitofp %15 : vector<16x128xi32> to vector<16x128xf32>
    %cst_7 = arith.constant dense<0.000000e+00> : vector<9x128xf32>
    %17 = tpu.matmul %2, %16, %cst_7 {dimension_numbers = #tpu.dot_dimension_numbers<[1], [0], [0], [1], [0, 0, 1, 1], [], []>} : vector<9x16xf32>, vector<16x128xf32>, vector<9x128xf32> -> vector<9x128xf32>
    %c0_8 = arith.constant 0 : index
    %c0_9 = arith.constant 0 : index
    %18 = vector.load %arg4[%c0_8, %c0_9] : memref<9x128xf32, #tpu.memory_space<vmem>>, vector<9x128xf32>
    tpu.vector_store %arg4[%c0_8, %c0_9], %17 {strides = array<i32>} : memref<9x128xf32, #tpu.memory_space<vmem>>, vector<9x128xf32>,
    return
  }
  func.func @transform_0(%arg0: i32) -> (i32, i32) {
    %c0_i32 = arith.constant 0 : i32
    %c0_i32_0 = arith.constant 0 : i32
    return %c0_i32, %arg0 : i32, i32
  }
  func.func @transform_1(%arg0: i32) -> (i32, i32) {
    %c0_i32 = arith.constant 0 : i32
    %c0_i32_0 = arith.constant 0 : i32
    %c0_i32_1 = arith.constant 0 : i32
    return %c0_i32, %c0_i32_0 : i32, i32
  }
  func.func @transform_2(%arg0: i32) -> (i32, i32) {
    %c0_i32 = arith.constant 0 : i32
    %c0_i32_0 = arith.constant 0 : i32
    %c0_i32_1 = arith.constant 0 : i32
    return %c0_i32, %c0_i32_0 : i32, i32
  }
  func.func @transform_3(%arg0: i32) -> (i32, i32) {
    %c0_i32 = arith.constant 0 : i32
    %c0_i32_0 = arith.constant 0 : i32
    return %c0_i32, %arg0 : i32, i32
  }
}

</mosaic_0001>

<bundles_post_ra>
// kernel: tpu_custom_call.1
= control target key start
LH: loop header
LB: loop body
LE: loop exit
PB: predicated region body
PF: predicated region fallthrough
CT: control target
= control target key end

     0   :  { %8 = vsyncpa [#allocation3], 0  ;;  %s521_s0 = inlined_call_operand.hbm [shape: f32[9,128], index: 0, kind: input, shape index: {}]   ;;  %s522_s1 = inlined_call_operand.hbm [shape: f32[16,9], index: 1, kind: input, shape index: {}]   ;;  %s523_s2 = inlined_call_operand.hbm [shape: f32[9,16], index: 2, kind: input, shape index: {}]   ;;  %s524_s3 = inlined_call_operand.hbm [shape: f32[9,128], index: 3, kind: output, shape index: {}]  }
   0x1   :  { %9 = vsyncpa [#allocation6], 0 }
   0x2   :  { %10 = vsyncpa [#allocation4], 0  ;;  %s424_s12 = smov [#allocation5]   ;;  %s425_s14 = smov [#allocation2]  }
   0x3   :  { %s28_s13 = sshll.u32 %s424_s12, 4  ;;  %s16_s15 = sshll.u32 %s425_s14, 4  ;;  %s29_s13 = int_to_ptr.vmem [resolvable:$true] %s28_s13  ;;  %s452_s15 = int_to_ptr.vmem [resolvable:$true] %s16_s15 }
   0x4   :  { %s330_s18 = scalar_lea.hbm %s522_s1, 256 }
   0x5   :  { %p331_p0 = scmp.ne.s32.totalorder %s522_s1, %s330_s18  ;;  %p334_p1 = scmp.lt.u32.totalorder %s330_s18, %s522_s1 }
   0x7   :  { %p336_p2 = pnand %p334_p1, %p331_p0 }
   0x9   :  { %339 = shalt.err (!%p336_p2)
}
   0xa   :  { %s340_s23 = scalar_lea.vmem %s29_s13, 256  ;;  %p345_p4 = scmp.lt.s32.totalorder %s29_s13, %s29_s13 }
   0xb   :  { %p341_p3 = scmp.ne.s32.totalorder %s29_s13, %s340_s23  ;;  %p346_p5 = scmp.lt.s32.totalorder %s340_s23, %s340_s23 }
   0xd   :  { %p347_p6 = por %p346_p5, %p345_p4 }
   0xf   :  { %p348_p7 = pnand %p347_p6, %p341_p3 }
  0x11   :  { %351 = shalt.err (!%p348_p7)
}
  0x12   :  { %s426_s24 = smov 128   ;;  %s427_s25 = smov 8  }
  0x13   :  { %34 = dma.hbm_to_vmem [thread:$0]  %s522_s1, 256, %s29_s13, [#allocation6], %s426_s24, %s426_s24, %s427_s25  }
  0x14   :  { %s352_s30 = scalar_lea.hbm %s521_s0, 256 }
  0x15   :  { %p353_p8 = scmp.ne.s32.totalorder %s521_s0, %s352_s30  ;;  %p356_p9 = scmp.lt.u32.totalorder %s352_s30, %s521_s0 }
  0x17   :  { %p358_p10 = pnand %p356_p9, %p353_p8 }
  0x19   :  { %361 = shalt.err (!%p358_p10)
}
  0x1a   :  { %s362_s8 = scalar_lea.vmem %s452_s15, 256  ;;  %p367_p12 = scmp.lt.s32.totalorder %s452_s15, %s452_s15 }
  0x1b   :  { %p363_p11 = scmp.ne.s32.totalorder %s452_s15, %s362_s8  ;;  %p368_p13 = scmp.lt.s32.totalorder %s362_s8, %s362_s8 }
  0x1d   :  { %p369_p0 = por %p368_p13, %p367_p12 }
  0x1f   :  { %p370_p1 = pnand %p369_p0, %p363_p11 }
  0x21   :  { %373 = shalt.err (!%p370_p1)
}
  0x22   :  { %22 = dma.hbm_to_vmem [thread:$0]  %s521_s0, 256, %s452_s15, [#allocation3], %s426_s24, %s426_s24, %s427_s25  }
  0x23   :  { %s428_s10 = smov [#allocation7]   ;;  %s374_s14 = scalar_lea.hbm %s523_s2, 256 }
  0x24   :  { %s40_s11 = sshll.u32 %s428_s10, 4  ;;  %p375_p2 = scmp.ne.s32.totalorder %s523_s2, %s374_s14  ;;  %s41_s11 = int_to_ptr.vmem [resolvable:$true] %s40_s11 }
  0x25   :  { %p378_p3 = scmp.lt.u32.totalorder %s374_s14, %s523_s2 }
  0x27   :  { %p380_p4 = pnand %p378_p3, %p375_p2 }
  0x29   :  { %383 = shalt.err (!%p380_p4)
}
  0x2a   :  { %s384_s20 = scalar_lea.vmem %s41_s11, 256  ;;  %p389_p6 = scmp.lt.s32.totalorder %s41_s11, %s41_s11 }
  0x2b   :  { %p385_p5 = scmp.ne.s32.totalorder %s41_s11, %s384_s20  ;;  %p390_p7 = scmp.lt.s32.totalorder %s384_s20, %s384_s20 }
  0x2d   :  { %p391_p8 = por %p390_p7, %p389_p6 }
  0x2f   :  { %p392_p9 = pnand %p391_p8, %p385_p5 }
  0x31   :  { %395 = shalt.err (!%p392_p9)
}
  0x32   :  { %46 = dma.hbm_to_vmem [thread:$0]  %s523_s2, 256, %s41_s11, [#allocation6], %s426_s24, %s426_s24, %s427_s25  }
  0x33   :  { %418 = dma.done.wait [#allocation3], 256  }
  0x34   :  { %419 = vsyncadd [#allocation3], 4294967040 }
  0x35   :  { %420 = dma.done.wait [#allocation6], 512  }
  0x36   :  { %421 = vsyncadd [#allocation6], 4294966784  ;;  %vm69_vm0 = vcmask 1040384   ;;  %vm62_vm1 = vcmask 72704   ;;  %vm429_vm2 = vmmov 1   ;;  %v56_v0 = vld [vmem:[#allocation2] sm:$0xff]  ;;  %v148_v10 = vlaneseq }
  0x37   :  { %vm313_vm3 = vmpackc.low %vm69_vm0, %vm429_vm2  ;;  %v57_v1 = vld [vmem:[#allocation2 + $0x8] sm:$0x1]  ;;  %v58_v2 = vld [vmem:[#allocation5] sm:$0xff]  ;;  %vm179_vm4 = vcmask 130048   ;;  %v430_v27 = vmov 1.0|1.0  }
  0x38   :  { %v312_v3 = vpack.c.bf16 %v57_v1, %v56_v0  ;;  %302 = vmatprep.mubr.msk.f32.mxu0 %vm62_vm1, %v58_v2  ;;  %v59_v4 = vld [vmem:[#allocation5 + $0x8] sm:$0xff]  ;;  %v60_v5 = vld [vmem:[#allocation7] sm:$0xff]  ;;  %v149_v13 = vshrl.u32 %v148_v10, 7  ;;  %v61_v28 = vld [vmem:[#allocation7 + $0x8] sm:$0x1]  ;;  %s431_s2 = smov [#allocation8]  }
  0x39   :  { %309 = vmatprep.mubr.msk.f32.mxu1 %vm179_vm4, %v60_v5  ;;  %s268_s21 = sshll.u32 %s431_s2, 4  ;;  %s269_s21 = int_to_ptr.vmem [resolvable:$true] %s268_s21 }
  0x3a   :  { %314 = vmatprep.subr.msk.bf16.mxu0 %vm313_vm3, %v312_v3  ;;  %v150_v16 = vadd.s32 8, %v149_v13  ;;  %s396_s22 = scalar_lea.vmem %s269_s21, 256  ;;  %p401_p11 = scmp.lt.s32.totalorder %s269_s21, %s269_s21 }
  0x3b   :  { %317 = vmatpush3.bf16.msk.msra.mxu0 %vm313_vm3, %v312_v3  ;;  %p397_p10 = scmp.ne.s32.totalorder %s269_s21, %s396_s22  ;;  %p402_p12 = scmp.lt.s32.totalorder %s396_s22, %s396_s22 }
  0x3d   :  { %p403_p13 = por %p402_p12, %p401_p11 }
  0x3e   :  { %303 = vmatmul.mubr.msk.f32.vlgmr.msra.gmra.mrb[0].mxu0 %vm62_vm1, %v59_v4 }
  0x3f   :  { %p404_p0 = pnand %p403_p13, %p397_p10 }
 0x111   :  { %v304_v6 = vpop.f32.mrb[0].mxu0 }
 0x112   :  { %v139_v7 = vpop.f32.mrb[1].mxu0 }
 0x113   :  { %v151_v8 = vmax.f32 %v139_v7, %v304_v6 }
 0x115   :  { %v152_v9 = vrot.slane %v151_v8, 4 }
 0x117   :  { %v153_v11 = vmax.f32 %v151_v8, %v152_v9 }
 0x119   :  { %v154_v12 = vrot.slane %v153_v11, 2 }
 0x11b   :  { %v155_v14 = vmax.f32 %v153_v11, %v154_v12 }
 0x11d   :  { %v156_v15 = vrot.slane %v155_v14, 1 }
 0x11f   :  { %v157_v17 = vmax.f32 %v155_v14, %v156_v15 }
 0x121   :  { %vm158_vm5 = vcmp.ge.f32.partialorder %v139_v7, %v157_v17  ;;  %vm159_vm6 = vcmp.ge.f32.partialorder %v304_v6, %v157_v17 }
 0x122   :  { %v160_v18 = vsel %vm158_vm5, %v149_v13, 16  ;;  %v161_v19 = vsel %vm159_vm6, %v150_v16, 16 }
 0x123   :  { %vm162_vm7 = vcmp.lt.s32.totalorder %v160_v18, %v161_v19 }
 0x124   :  { %v163_v20 = vsel %vm162_vm7, %v160_v18, %v161_v19 }
 0x125   :  { %v164_v21 = vrot.slane %v163_v20, 4 }
 0x127   :  { %vm165_vm8 = vcmp.lt.s32.totalorder %v163_v20, %v164_v21 }
 0x128   :  { %v166_v22 = vsel %vm165_vm8, %v163_v20, %v164_v21 }
 0x129   :  { %v167_v23 = vrot.slane %v166_v22, 2 }
 0x12b   :  { %vm168_vm9 = vcmp.lt.s32.totalorder %v166_v22, %v167_v23 }
 0x12c   :  { %v169_v24 = vsel %vm168_vm9, %v166_v22, %v167_v23 }
 0x12d   :  { %v170_v25 = vrot.slane %v169_v24, 1 }
 0x12f   :  { %vm171_vm10 = vcmp.lt.s32.totalorder %v169_v24, %v170_v25 }
 0x130   :  { %v172_v26 = vsel %vm171_vm10, %v169_v24, %v170_v25 }
 0x131   :  { %vm173_vm11 = vcmp.eq.s32.totalorder %v149_v13, %v172_v26  ;;  %vm174_vm12 = vcmp.eq.s32.totalorder %v150_v16, %v172_v26 }
 0x132   :  { %vm318_vm13 = vmpackc.low %vm174_vm12, %vm173_vm11 }
 0x133   :  { %319 = vmatprep.subr.msk.bf16.mxu1 %vm318_vm13, %v430_v27 }
 0x134   :  { %321 = vmatpush3.bf16.msk.msra.mxu1 %vm318_vm13, %v430_v27 }
 0x137   :  { %310 = vmatmul.mubr.msk.f32.vlgmr.msra.gmra.mrb[0].mxu1 %vm179_vm4, %v61_v28 }
 0x20a   :  { %v311_v29 = vpop.f32.mrb[0].mxu1 }
 0x20b   :  { %262 = vst [vmem:[#allocation8 + $0x8] sm:$0x1] %v311_v29  ;;  %v252_v30 = vpop.f32.mrb[1].mxu1 }
 0x20c   :  { %261 = vst [vmem:[#allocation8] sm:$0xff] %v252_v30 }
 0x20d   :  { %407 = shalt.err (!%p404_p0)
}
 0x20e   :  { %s408_s27 = scalar_lea.hbm %s524_s3, 256 }
 0x20f   :  { %p409_p1 = scmp.ne.s32.totalorder %s524_s3, %s408_s27  ;;  %p412_p2 = scmp.lt.u32.totalorder %s408_s27, %s524_s3 }
 0x211   :  { %p414_p3 = pnand %p412_p2, %p409_p1 }
 0x213   :  { %417 = shalt.err (!%p414_p3)
}
 0x214   :  { %274 = dma.vmem_to_hbm [thread:$0]  %s269_s21, 256, %s524_s3, [#allocation4], %s426_s24, %s426_s24, %s427_s25  }
 0x215   :  { %422 = dma.done.wait [#allocation4], 256  }
 0x216   :  { %423 = vsyncadd [#allocation4], 4294967040 }
 0x217   :  { %278 = vsyncpa [#allocation3], 1 }
 0x218   :  { %279 = vsyncpa [#allocation6], 1 }
 0x219   :  { %280 = vsyncpa [#allocation4], 1 }

</bundles_post_ra>
